<compile_context>
chip_gen: v7x
topology: tpu7x:2x2x1
jax: 0.10.0
libtpu: 0.0.40
codegen_flags: <defaults>
</compile_context>

<pallas_src>
import functools

import jax
import jax.numpy as jnp
from jax.experimental import pallas as pl
from jax.experimental.pallas import tpu as pltpu


def _se_kernel(x_ref, w1t_ref, b1_ref, w2t_ref, b2_ref, o_ref, *, inv_hw):
    # x_ref:   (Nb, C, HW)  native dtype
    # w1t_ref: (C, Cr)   b1_ref: (1, Cr)    (weights pre-transposed in wrapper)
    # w2t_ref: (Cr, C)   b2_ref: (1, C)
    x = x_ref[...]                                            # (Nb, C, HW)

    # ---- Squeeze: global average pool over spatial lanes (f32 accumulate) ----
    y = jnp.sum(x, axis=2, dtype=jnp.float32) * inv_hw        # (Nb, C)

    # ---- Excitation: tiny FCs on the VPU ----
    w1t = w1t_ref[...]                                        # (C, Cr)
    w2t = w2t_ref[...]                                        # (Cr, C)
    h = jnp.sum(y[:, :, None] * w1t[None, :, :], axis=1) + b1_ref[...]   # (Nb, Cr)
    h = jnp.maximum(h, 0.0)
    s = jnp.sum(h[:, :, None] * w2t[None, :, :], axis=1) + b2_ref[...]   # (Nb, C)
    s = jax.nn.sigmoid(s)

    # ---- Scale: per-(sample, channel) gate broadcast over spatial lanes ----
    o_ref[...] = (x * s.astype(x.dtype)[:, :, None]).astype(o_ref.dtype)


def se_block(x, w1, b1, w2, b2):
    """x: (N, C, H, W); w1: (Cr, C); b1: (Cr,); w2: (C, Cr); b2: (C,)."""
    N, C, H, W = x.shape
    Cr = w1.shape[0]
    HW = H * W
    itemsize = jnp.dtype(x.dtype).itemsize

    # Spatial -> lanes, channels -> sublanes (free, contiguous reshape).
    x3 = x.reshape(N, C, HW)

    # VMEM footprint of one sample's slab, accounting for the (sublane, lane)
    # tile padding Mosaic applies in VMEM.
    sublane = 8 if itemsize >= 4 else (16 if itemsize == 2 else 32)
    c_pad = -(-C // sublane) * sublane
    hw_pad = -(-HW // 128) * 128
    per_sample_vmem = c_pad * hw_pad * itemsize

    # Samples per grid step: in + out slabs, double-buffered (4 live copies),
    # under a budget with headroom on every generation (v7x VMEM = 64 MiB).
    budget = 16 * 1024 * 1024
    nb = int(max(1, min(N, budget // (4 * per_sample_vmem))))
    grid = (pl.cdiv(N, nb),)
    # TODO(synk): if a single sample's slab (C*H*W) itself overflows VMEM
    # (very large spatial), fall back to a two-pass pool-then-scale schedule
    # chunked over the spatial axis; not needed at SE-block-typical shapes.

    # Pre-transpose 1x1-conv weights once (no per-step in-kernel relayout).
    w1t = w1.T                                   # (C, Cr)
    w2t = w2.T                                   # (Cr, C)
    b1_2d = b1.reshape(1, Cr)
    b2_2d = b2.reshape(1, C)

    vmem_limit = int(min(48 * 1024 * 1024,
                         max(32 * 1024 * 1024,
                             5 * nb * per_sample_vmem + (1 << 21))))

    cost = pl.CostEstimate(
        flops=N * (2 * C * HW + 4 * C * Cr + 2 * C),
        transcendentals=N * C,
        bytes_accessed=2 * N * C * HW * itemsize + (2 * C * Cr + C + Cr) * 4,
    )

    kernel = functools.partial(_se_kernel, inv_hw=1.0 / HW)

    out = pl.pallas_call(
        kernel,
        out_shape=jax.ShapeDtypeStruct((N, C, HW), x.dtype),
        grid_spec=pltpu.PrefetchScalarGridSpec(
            num_scalar_prefetch=0,
            grid=grid,
            in_specs=[
                pl.BlockSpec((nb, C, HW), lambda i: (i, 0, 0)),  # x batch-block
                pl.BlockSpec((C, Cr), lambda i: (0, 0)),          # FC1 weight^T
                pl.BlockSpec((1, Cr), lambda i: (0, 0)),          # FC1 bias
                pl.BlockSpec((Cr, C), lambda i: (0, 0)),          # FC2 weight^T
                pl.BlockSpec((1, C), lambda i: (0, 0)),           # FC2 bias
            ],
            out_specs=pl.BlockSpec((nb, C, HW), lambda i: (i, 0, 0)),
        ),
        compiler_params=pltpu.CompilerParams(
            dimension_semantics=("parallel",),
            vmem_limit_bytes=vmem_limit,
        ),
        cost_estimate=cost,
    )(x3, w1t, b1_2d, w2t, b2_2d)

    return out.reshape(N, C, H, W)


def se_block_ref(x, w1, b1, w2, b2):
    """Plain-JAX reference for validation."""
    y = jnp.mean(x, axis=(2, 3))                              # (N, C)
    h = jnp.maximum(y @ w1.T + b1, 0.0)                       # (N, Cr)
    s = jax.nn.sigmoid(h @ w2.T + b2)                         # (N, C)
    return x * s[:, :, None, None]


def _make_inputs(key, N, C, H, W, reduction):
    Cr = max(1, C // reduction)
    kx, k1, k2, k3, k4 = jax.random.split(key, 5)
    x = jax.random.normal(kx, (N, C, H, W), dtype=jnp.float32)
    w1 = jax.random.normal(k1, (Cr, C), dtype=jnp.float32) * 0.5
    b1 = jax.random.normal(k2, (Cr,), dtype=jnp.float32) * 0.1
    w2 = jax.random.normal(k3, (C, Cr), dtype=jnp.float32) * 0.5
    b2 = jax.random.normal(k4, (C,), dtype=jnp.float32) * 0.1
    return x, w1, b1, w2, b2


if __name__ == "__main__":
    key = jax.random.PRNGKey(0)
    k_a, k_b, k_c = jax.random.split(key, 3)

    # Case 1: module config c1=4, reduction=4 (Cr=1); spatial 16x16 (lane-dense).
    x, w1, b1, w2, b2 = _make_inputs(k_a, N=2, C=4, H=16, W=16, reduction=4)
    out = se_block(x, w1, b1, w2, b2)
    jax.block_until_ready(out)
    ref = se_block_ref(x, w1, b1, w2, b2)
    assert out.shape == x.shape
    assert jnp.allclose(out, ref, atol=1e-5, rtol=1e-5), "mismatch vs reference (case 1)"

    # Case 2: ragged spatial below one lane tile (7x7=49), c1=8, reduction=4.
    x2, w1b, b1b, w2b, b2b = _make_inputs(k_b, N=3, C=8, H=7, W=7, reduction=4)
    out2 = se_block(x2, w1b, b1b, w2b, b2b)
    jax.block_until_ready(out2)
    ref2 = se_block_ref(x2, w1b, b1b, w2b, b2b)
    assert out2.shape == x2.shape
    assert jnp.allclose(out2, ref2, atol=1e-5, rtol=1e-5), "mismatch vs reference (case 2)"

    # Case 3: ragged spatial spanning several lane tiles (20x20=400), c1=16.
    x3_, w1c, b1c, w2c, b2c = _make_inputs(k_c, N=2, C=16, H=20, W=20, reduction=4)
    out3 = se_block(x3_, w1c, b1c, w2c, b2c)
    jax.block_until_ready(out3)
    ref3 = se_block_ref(x3_, w1c, b1c, w2c, b2c)
    assert out3.shape == x3_.shape
    assert jnp.allclose(out3, ref3, atol=1e-5, rtol=1e-5), "mismatch vs reference (case 3)"

    print("KERNEL_OK")
</pallas_src>

<mosaic_0001>
module attributes {stable_mosaic.version = 11 : i64} {
  func.func @_se_kernel(%arg0: i32, %arg1: memref<2x4x256xf32, #tpu.memory_space<vmem>>, %arg2: memref<4x1xf32, #tpu.memory_space<vmem>>, %arg3: memref<1x1xf32, #tpu.memory_space<vmem>>, %arg4: memref<1x4xf32, #tpu.memory_space<vmem>>, %arg5: memref<1x4xf32, #tpu.memory_space<vmem>>, %arg6: memref<2x4x256xf32, #tpu.memory_space<vmem>>) attributes {dimension_semantics = [#tpu.dimension_semantics<parallel>], iteration_bounds = array<i64: 1>, scalar_prefetch = 0 : i64, scratch_operands = 0 : i64, tpu.core_type = #tpu.core_type<tc>, window_params = [{transform_indices = @transform_0, window_bounds = array<i64: 2, 4, 256>}, {pipeline_mode = #tpu.pipeline_mode<synchronous>, transform_indices = @transform_1, window_bounds = array<i64: 4, 1>}, {pipeline_mode = #tpu.pipeline_mode<synchronous>, transform_indices = @transform_2, window_bounds = array<i64: 1, 1>}, {pipeline_mode = #tpu.pipeline_mode<synchronous>, transform_indices = @transform_3, window_bounds = array<i64: 1, 4>}, {pipeline_mode = #tpu.pipeline_mode<synchronous>, transform_indices = @transform_4, window_bounds = array<i64: 1, 4>}, {transform_indices = @transform_5, window_bounds = array<i64: 2, 4, 256>}]} {
    %c0 = arith.constant 0 : index
    %c0_0 = arith.constant 0 : index
    %c0_1 = arith.constant 0 : index
    %0 = vector.load %arg1[%c0, %c0_0, %c0_1] : memref<2x4x256xf32, #tpu.memory_space<vmem>>, vector<2x4x256xf32>
    %cst = arith.constant dense<0.000000e+00> : vector<2x4xf32>
    %1 = vector.multi_reduction <add>, %0, %cst [2] : vector<2x4x256xf32> to vector<2x4xf32>
    %cst_2 = arith.constant 3.906250e-03 : f32
    %2 = vector.broadcast %cst_2 : f32 to vector<2x4xf32>
    %3 = arith.mulf %1, %2 : vector<2x4xf32>
    %c0_3 = arith.constant 0 : index
    %c0_4 = arith.constant 0 : index
    %4 = vector.load %arg2[%c0_3, %c0_4] : memref<4x1xf32, #tpu.memory_space<vmem>>, vector<4x1xf32>
    %c0_5 = arith.constant 0 : index
    %c0_6 = arith.constant 0 : index
    %5 = vector.load %arg4[%c0_5, %c0_6] : memref<1x4xf32, #tpu.memory_space<vmem>>, vector<1x4xf32>
    %6 = vector.shape_cast %3 : vector<2x4xf32> to vector<2x4x1xf32>
    %7 = vector.shape_cast %4 : vector<4x1xf32> to vector<1x4x1xf32>
    %8 = vector.broadcast %7 : vector<1x4x1xf32> to vector<2x4x1xf32>
    %9 = arith.mulf %6, %8 : vector<2x4x1xf32>
    %cst_7 = arith.constant dense<0.000000e+00> : vector<2x1xf32>
    %10 = vector.multi_reduction <add>, %9, %cst_7 [1] : vector<2x4x1xf32> to vector<2x1xf32>
    %c0_8 = arith.constant 0 : index
    %c0_9 = arith.constant 0 : index
    %11 = vector.load %arg3[%c0_8, %c0_9] : memref<1x1xf32, #tpu.memory_space<vmem>>, vector<1x1xf32>
    %12 = vector.broadcast %11 : vector<1x1xf32> to vector<2x1xf32>
    %13 = arith.addf %10, %12 : vector<2x1xf32>
    %cst_10 = arith.constant 0.000000e+00 : f32
    %14 = vector.broadcast %cst_10 : f32 to vector<2x1xf32>
    %15 = arith.maximumf %13, %14 : vector<2x1xf32>
    %16 = vector.shape_cast %15 : vector<2x1xf32> to vector<2x1x1xf32>
    %17 = vector.shape_cast %5 : vector<1x4xf32> to vector<1x1x4xf32>
    %18 = vector.broadcast %16 : vector<2x1x1xf32> to vector<2x1x4xf32>
    %19 = vector.broadcast %17 : vector<1x1x4xf32> to vector<2x1x4xf32>
    %20 = arith.mulf %18, %19 : vector<2x1x4xf32>
    %cst_11 = arith.constant dense<0.000000e+00> : vector<2x4xf32>
    %21 = vector.multi_reduction <add>, %20, %cst_11 [1] : vector<2x1x4xf32> to vector<2x4xf32>
    %c0_12 = arith.constant 0 : index
    %c0_13 = arith.constant 0 : index
    %22 = vector.load %arg5[%c0_12, %c0_13] : memref<1x4xf32, #tpu.memory_space<vmem>>, vector<1x4xf32>
    %23 = vector.broadcast %22 : vector<1x4xf32> to vector<2x4xf32>
    %24 = arith.addf %21, %23 : vector<2x4xf32>
    %25 = arith.negf %24 : vector<2x4xf32>
    %26 = math.exp %25 : vector<2x4xf32>
    %cst_14 = arith.constant 1.000000e+00 : f32
    %27 = vector.broadcast %cst_14 : f32 to vector<2x4xf32>
    %28 = arith.addf %27, %26 : vector<2x4xf32>
    %29 = arith.divf %27, %28 : vector<2x4xf32>
    %30 = vector.shape_cast %29 : vector<2x4xf32> to vector<2x4x1xf32>
    %31 = vector.broadcast %30 : vector<2x4x1xf32> to vector<2x4x256xf32>
    %32 = arith.mulf %0, %31 : vector<2x4x256xf32>
    %c0_15 = arith.constant 0 : index
    %c0_16 = arith.constant 0 : index
    %c0_17 = arith.constant 0 : index
    %33 = vector.load %arg6[%c0_15, %c0_16, %c0_17] : memref<2x4x256xf32, #tpu.memory_space<vmem>>, vector<2x4x256xf32>
    tpu.vector_store %arg6[%c0_15, %c0_16, %c0_17], %32 {strides = array<i32>} : memref<2x4x256xf32, #tpu.memory_space<vmem>>, vector<2x4x256xf32>,
    return
  }
  func.func @transform_0(%arg0: i32) -> (i32, i32, i32) {
    %c0_i32 = arith.constant 0 : i32
    %c0_i32_0 = arith.constant 0 : i32
    %c0_i32_1 = arith.constant 0 : i32
    return %arg0, %c0_i32, %c0_i32_0 : i32, i32, i32
  }
  func.func @transform_1(%arg0: i32) -> (i32, i32) {
    %c0_i32 = arith.constant 0 : i32
    %c0_i32_0 = arith.constant 0 : i32
    %c0_i32_1 = arith.constant 0 : i32
    return %c0_i32, %c0_i32_0 : i32, i32
  }
  func.func @transform_2(%arg0: i32) -> (i32, i32) {
    %c0_i32 = arith.constant 0 : i32
    %c0_i32_0 = arith.constant 0 : i32
    %c0_i32_1 = arith.constant 0 : i32
    return %c0_i32, %c0_i32_0 : i32, i32
  }
  func.func @transform_3(%arg0: i32) -> (i32, i32) {
    %c0_i32 = arith.constant 0 : i32
    %c0_i32_0 = arith.constant 0 : i32
    %c0_i32_1 = arith.constant 0 : i32
    return %c0_i32, %c0_i32_0 : i32, i32
  }
  func.func @transform_4(%arg0: i32) -> (i32, i32) {
    %c0_i32 = arith.constant 0 : i32
    %c0_i32_0 = arith.constant 0 : i32
    %c0_i32_1 = arith.constant 0 : i32
    return %c0_i32, %c0_i32_0 : i32, i32
  }
  func.func @transform_5(%arg0: i32) -> (i32, i32, i32) {
    %c0_i32 = arith.constant 0 : i32
    %c0_i32_0 = arith.constant 0 : i32
    %c0_i32_1 = arith.constant 0 : i32
    return %arg0, %c0_i32, %c0_i32_0 : i32, i32, i32
  }
}

</mosaic_0001>

<bundles_post_ra>
// kernel: tpu_custom_call.1
= control target key start
LH: loop header
LB: loop body
LE: loop exit
PB: predicated region body
PF: predicated region fallthrough
CT: control target
= control target key end

     0   :  { %s336_s0 = inlined_call_operand.hbm [shape: f32[2,4,256], index: 0, kind: input, shape index: {}]   ;;  %s337_s1 = inlined_call_operand.vmem [shape: f32[4,1], index: 1, kind: input, shape index: {}]   ;;  %s338_s2 = inlined_call_operand.<no memory space> [shape: f32[1,1], index: 2, kind: input, shape index: {}]   ;;  %s339_s3 = inlined_call_operand.vmem [shape: f32[1,4], index: 3, kind: input, shape index: {}]   ;;  %s340_s4 = inlined_call_operand.vmem [shape: f32[1,4], index: 4, kind: input, shape index: {}]   ;;  %s341_s5 = inlined_call_operand.hbm [shape: f32[2,4,256], index: 5, kind: output, shape index: {}]  }
   0x1   :  { %v10_v0 = vstv %s338_s2 }
   0x2   :  { %11 = vst [vmem:[#allocation2] sm:$0x1] %v10_v0 }
   0x3   :  { %12 = vsyncpa [#allocation4], 0 }
   0x4   :  { %13 = vsyncpa [#allocation5], 0  ;;  %s246_s20 = smov [#allocation3]   ;;  %s198_s24 = scalar_lea.hbm %s336_s0, 256 }
   0x5   :  { %s19_s21 = sshll.u32 %s246_s20, 4  ;;  %p199_p0 = scmp.ne.s32.totalorder %s336_s0, %s198_s24  ;;  %s20_s21 = int_to_ptr.vmem [resolvable:$true] %s19_s21 }
   0x6   :  { %p202_p1 = scmp.lt.u32.totalorder %s198_s24, %s336_s0 }
   0x8   :  { %p204_p2 = pnand %p202_p1, %p199_p0 }
   0xa   :  { %207 = shalt.err (!%p204_p2)
}
   0xb   :  { %s208_s2 = scalar_lea.vmem %s20_s21, 256  ;;  %p213_p4 = scmp.lt.s32.totalorder %s20_s21, %s20_s21 }
   0xc   :  { %p209_p3 = scmp.ne.s32.totalorder %s20_s21, %s208_s2  ;;  %p214_p5 = scmp.lt.s32.totalorder %s208_s2, %s208_s2 }
   0xe   :  { %p215_p6 = por %p214_p5, %p213_p4 }
  0x10   :  { %p216_p7 = pnand %p215_p6, %p209_p3 }
  0x12   :  { %219 = shalt.err (!%p216_p7)
}
  0x13   :  { %s247_s29 = smov 128   ;;  %s248_s30 = smov 8  }
  0x14   :  { %25 = dma.hbm_to_vmem [thread:$0]  %s336_s0, 256, %s20_s21, [#allocation4], %s247_s29, %s247_s29, %s248_s30  }
  0x15   :  { %242 = dma.done.wait [#allocation4], 256  }
  0x16   :  { %243 = vsyncadd [#allocation4], 4294967040  ;;  %vm45_vm0 = vcmask 1043456   ;;  %v300_v1 = vld [vmem:[#allocation3] sm:$0xff]  ;;  %v302_v2 = vld [vmem:[#allocation3 + $0x8] sm:$0xff]  ;;  %v249_v11 = vmov 0   ;;  %v123_v50 = vlaneseq }
  0x17   :  { %v41_v3 = vcombine.high %v300_v1, %v300_v1  ;;  %v46_v4 = vsel %vm45_vm0, %v300_v1, 0.0  ;;  %v42_v5 = vcombine.high %v302_v2, %v302_v2  ;;  %v51_v7 = vsel %vm45_vm0, %v302_v2, 0.0  ;;  %186 = vset.pattern.permute.xlu1 %v249_v11  ;;  %187 = vset.pattern.permute.xlu0 %v249_v11  ;;  %v58_v12 = vld [vmem:[%s337_s1] sm:$0xf] }
  0x18   :  { %vm62_vm1 = vcmask 3072   ;;  %v176_v29 = vld [vmem:[#allocation2] ss:$0 sm:$0xff]  ;;  %v124_v53 = vshrl.u32 %v123_v50, 7  ;;  %v250_v59 = vmov 839922192  }
  0x19   :  { %v47_v6 = vsel %vm45_vm0, %v41_v3, 0.0  ;;  %v52_v8 = vsel %vm45_vm0, %v42_v5, 0.0  ;;  %v59_v38 = vld [vmem:[%s339_s3] sm:$0x1]  ;;  %v140_v60 = vunpack.c.l.s4 %v250_v59  ;;  %s251_s3 = smov [#allocation6]  }
  0x1a   :  { %v48_v9 = vadd.f32 %v47_v6, %v46_v4  ;;  %v53_v10 = vadd.f32 %v52_v8, %v51_v7  ;;  %v177_v39 = vld [vmem:[%s340_s4] ss:$0 sm:$0xff]  ;;  %v125_v54 = vsub.s32 0, %v124_v53  ;;  %s164_s4 = sshll.u32 %s251_s3, 4  ;;  %s165_s4 = int_to_ptr.vmem [resolvable:$true] %s164_s4 }
  0x1b   :  { %v141_v61 = vunpack.c.0.s8 %v140_v60  ;;  %s220_s12 = scalar_lea.vmem %s165_s4, 256  ;;  %p225_p9 = scmp.lt.s32.totalorder %s165_s4, %s165_s4 }
  0x1c   :  { %49 = vadd.xlane.f32.xlu0 %v48_v9  ;;  %p221_p8 = scmp.ne.s32.totalorder %s165_s4, %s220_s12  ;;  %p226_p10 = scmp.lt.s32.totalorder %s220_s12, %s220_s12 }
  0x1d   :  { %v144_v62 = vsub.s32 %v141_v61, %v124_v53 }
  0x1e   :  { %p227_p11 = por %p226_p10, %p225_p9 }
  0x20   :  { %54 = vadd.xlane.f32.xlu0 %v53_v10  ;;  %p228_p12 = pnand %p227_p11, %p221_p8 }
  0xa9   :  { %v50_v13 = vpop.xlane.xlu0 %49 }
  0xaa   :  { %v56_v14 = vmul.f32 0.00390625, %v50_v13 }
  0xac   :  { %v60_v15 = vmul.f32 %v58_v12, %v56_v14 }
  0xad   :  { %v55_v16 = vpop.xlane.xlu0 %54 }
  0xae   :  { %v63_v17 = vsel %vm62_vm1, %v60_v15, 0.0  ;;  %v57_v18 = vmul.f32 0.00390625, %v55_v16 }
  0xaf   :  { %v64_v19 = vrot.slane %v63_v17, 4 }
  0xb0   :  { %v61_v20 = vmul.f32 %v58_v12, %v57_v18 }
  0xb1   :  { %v65_v21 = vadd.f32 %v64_v19, %v63_v17 }
  0xb2   :  { %v70_v22 = vsel %vm62_vm1, %v61_v20, 0.0 }
  0xb3   :  { %v66_v23 = vrot.slane %v65_v21, 2  ;;  %v71_v24 = vrot.slane %v70_v22, 4 }
  0xb5   :  { %v72_v25 = vadd.f32 %v71_v24, %v70_v22  ;;  %v67_v26 = vadd.f32 %v66_v23, %v65_v21 }
  0xb7   :  { %v73_v27 = vrot.slane %v72_v25, 2  ;;  %v68_v28 = vrot.slane %v67_v26, 1 }
  0xb9   :  { %v74_v30 = vadd.f32 %v73_v27, %v72_v25  ;;  %v69_v31 = vadd.f32 %v68_v28, %v67_v26 }
  0xbb   :  { %v84_v32 = vadd.f32 %v176_v29, %v69_v31  ;;  %v75_v33 = vrot.slane %v74_v30, 1 }
  0xbd   :  { %v86_v34 = vmax.f32 %v84_v32, 0.0  ;;  %v76_v35 = vadd.f32 %v75_v33, %v74_v30 }
  0xbf   :  { %90 = vperm.xlu1 %186, %v86_v34   ;;  %v85_v36 = vadd.f32 %v176_v29, %v76_v35 }
  0xc1   :  { %v87_v37 = vmax.f32 %v85_v36, 0.0 }
  0xc3   :  { %95 = vperm.xlu1 %186, %v87_v37  }
 0x13e   :  { %v91_v40 = vpop.permute.xlu1 %90 }
 0x13f   :  { %v98_v41 = vmul.f32 %v91_v40, %v59_v38 }
 0x141   :  { %v109_v42 = vadd.f32 %v177_v39, %v98_v41 }
 0x142   :  { %v96_v43 = vpop.permute.xlu1 %95 }
 0x143   :  { %v178_v44 = vmul.f32 -1.442695, %v109_v42  ;;  %v99_v45 = vmul.f32 %v96_v43, %v59_v38 }
 0x145   :  { %190 = vpow2.f32 %v178_v44  ;;  %v110_v46 = vadd.f32 %v177_v39, %v99_v45 }
 0x147   :  { %v179_v47 = vmul.f32 -1.442695, %v110_v46 }
 0x149   :  { %192 = vpow2.f32 %v179_v47 }
 0x14f   :  { %v191_v48 = vpop.eup %190 }
 0x150   :  { %v117_v49 = vadd.f32 1.0, %v191_v48 }
 0x152   :  { %194 = vrcp.f32 %v117_v49 }
 0x153   :  { %v193_v51 = vpop.eup %192 }
 0x154   :  { %v118_v52 = vadd.f32 1.0, %v193_v51 }
 0x156   :  { %196 = vrcp.f32 %v118_v52 }
 0x15c   :  { %v195_v55 = vpop.eup %194 }
 0x15d   :  { %v126_v56 = vrot.slane %v195_v55, %v125_v54 }
 0x15f   :  { %128 = vbcast.lane.b32.xlu0 %v126_v56, 256 }
 0x160   :  { %v197_v57 = vpop.eup %196 }
 0x161   :  { %v133_v58 = vrot.slane %v197_v57, %v125_v54 }
 0x163   :  { %135 = vbcast.lane.b32.xlu1 %v133_v58, 256 }
 0x1d1   :  { %v129_v63 = vpop.permute.xlu0 %128 }
 0x1d2   :  { %v145_v0 = vrot.slane %v129_v63, %v144_v62 }
 0x1d4   :  { %v155_v3 = vmul.f32 %v145_v0, %v300_v1 }
 0x1d5   :  { %v136_v4 = vpop.permute.xlu1 %135 }
 0x1d6   :  { %157 = vst [vmem:[#allocation6] sm:$0xff] %v155_v3  ;;  %v152_v5 = vrot.slane %v136_v4, %v144_v62 }
 0x1d8   :  { %v156_v6 = vmul.f32 %v152_v5, %v302_v2 }
 0x1da   :  { %158 = vst [vmem:[#allocation6 + $0x8] sm:$0xff] %v156_v6 }
 0x1db   :  { %231 = shalt.err (!%p228_p12)
}
 0x1dc   :  { %s232_s15 = scalar_lea.hbm %s341_s5, 256 }
 0x1dd   :  { %p233_p13 = scmp.ne.s32.totalorder %s341_s5, %s232_s15  ;;  %p236_p0 = scmp.lt.u32.totalorder %s232_s15, %s341_s5 }
 0x1df   :  { %p238_p1 = pnand %p236_p0, %p233_p13 }
 0x1e1   :  { %241 = shalt.err (!%p238_p1)
}
 0x1e2   :  { %170 = dma.vmem_to_hbm [thread:$0]  %s165_s4, 256, %s341_s5, [#allocation5], %s247_s29, %s247_s29, %s248_s30  }
 0x1e3   :  { %244 = dma.done.wait [#allocation5], 256  }
 0x1e4   :  { %245 = vsyncadd [#allocation5], 4294967040 }
 0x1e5   :  { %174 = vsyncpa [#allocation4], 1 }
 0x1e6   :  { %175 = vsyncpa [#allocation5], 1 }

</bundles_post_ra>
